<compile_context>
chip_gen: v7x
topology: tpu7x:2x2x1
jax: 0.10.0
libtpu: 0.0.40
codegen_flags: <defaults>
</compile_context>

<pallas_src>
import functools

import jax
import jax.numpy as jnp
from jax.experimental import pallas as pl
from jax.experimental.pallas import tpu as pltpu


def _round_up(x, m):
    return ((x + m - 1) // m) * m


def _pad128(x):
    return _round_up(x, 128)


def _vmem_capacity_bytes():
    """Per-core VMEM capacity; conservative 64 MiB (v7x) fallback if unknown."""
    try:
        cap = int(pltpu.get_tpu_info().vmem_capacity_bytes)
        if cap < 16 * 1024 * 1024:
            cap = 64 * 1024 * 1024
    except Exception:
        cap = 64 * 1024 * 1024
    return cap


def _pick_batch_tile(bs, per_row_buf_bytes, temp_row_bytes, fixed_bytes,
                     num_partitions):
    """Largest batch tile whose double-buffered padded working set fits the budget."""
    cap = _vmem_capacity_bytes()
    budget = cap // 2                       # leave headroom for temps / compiler scratch
    denom = max(1, 2 * per_row_buf_bytes + temp_row_bytes)
    tb = (budget - fixed_bytes) // denom
    # No point exceeding one partition's share of the batch.
    tb = min(tb, _round_up(pl.cdiv(bs, num_partitions), 8))
    tb = max(8, (tb // 8) * 8)              # (8,128) sublane constraint when tiling
    if tb >= bs:
        tb = bs                             # full-extent block is always legal
    return tb, cap


def _loss_kernel(od_ref, lbl_ref, rec_ref, img_ref, seg_ref,
                 margin_out, recon_out,
                 margin_acc, recon_acc,
                 *, m_p, m_m, lmbd, batch_size, tile_b, num_classes):
    p = pl.program_id(0)                    # partition (core) index
    i = pl.program_id(1)                    # step within the partition
    steps = pl.num_programs(1)

    @pl.when(i == 0)
    def _init():
        margin_acc[...] = jnp.zeros_like(margin_acc)
        recon_acc[...] = jnp.zeros_like(recon_acc)

    # Logical (un-clamped) batch-block index -> row-validity mask. Blocks past the
    # end of the batch are clamped in the index_map but fully masked out here, so
    # ragged tiles / empty partitions never pollute the sums.
    blk = p * steps + i
    row = blk * tile_b + jax.lax.broadcasted_iota(jnp.int32, (tile_b, 1), 0)
    valid = row < batch_size                                   # (TB, 1) bool

    # ---- margin loss: capsule norms via MXU segment-sum on lane-dense od -----
    od = od_ref[...].astype(jnp.float32)                       # (TB, NC*DC)
    v_sq = jnp.dot(od * od, seg_ref[...],
                   preferred_element_type=jnp.float32,
                   precision=jax.lax.Precision.HIGHEST)        # (TB, 128)
    v_c = jnp.sqrt(v_sq)
    m1 = jnp.maximum(0.0, m_p - v_c) ** 2
    m0 = jnp.maximum(0.0, v_c - m_m) ** 2
    cls = jax.lax.broadcasted_iota(jnp.int32, (tile_b, 128), 1)
    t = (cls == lbl_ref[...]).astype(jnp.float32)              # one-hot rebuilt on VPU
    lm0 = lmbd * m0
    lk = lm0 + t * (m1 - lm0)               # == t*m1 + lmbd*(1-t)*m0, one fewer mul
    lk = jnp.where(valid & (cls < num_classes), lk, 0.0)
    margin_acc[...] += jnp.sum(lk, axis=0, keepdims=True)      # sublane-only reduce

    # ---- reconstruction loss (x2 and /B folded into the wrapper finalize) ----
    diff = rec_ref[...].astype(jnp.float32) - img_ref[...].astype(jnp.float32)
    recon_acc[...] += jnp.sum(jnp.where(valid, diff * diff, 0.0),
                              axis=0, keepdims=True)

    @pl.when(i == steps - 1)
    def _finalize():
        margin_out[...] = jnp.sum(margin_acc[...]).reshape(1, 1, 1)
        recon_out[...] = jnp.sum(recon_acc[...]).reshape(1, 1, 1)


def loss_layer_forward(out_digit, reconstruction, target, image,
                       regularization_scale=0.0005, m_p=0.9, m_m=0.1, lmbd=0.5,
                       num_partitions=2):
    """Pallas equivalent of LossLayer.forward -> (TotalL, MarginL, ReconstructionL)."""
    bs, nc, dc = out_digit.shape
    assert nc <= 128, "margin loss kernel assumes num_classes <= 128"
    ncdc = nc * dc
    od2d = out_digit.reshape(bs, ncdc)                         # lane-dense capsules (free)
    image_flat = image.reshape(bs, -1)                         # NCHW -> (B, D) (free)
    d = image_flat.shape[1]

    # Integer labels instead of streaming the f32 one-hot (standard one-hot target
    # for capsule nets; pass integer labels directly to skip the argmax).
    if target.ndim == 2:
        labels = jnp.argmax(target, axis=-1).astype(jnp.int32)
    else:
        labels = target.astype(jnp.int32)
    labels = labels.reshape(bs, 1)

    # Constant segment matrix for the MXU capsule-norm reduction: seg[j, c] = 1
    # iff capsule index j // DC == c (classes beyond nc map to zero columns).
    seg = (jnp.arange(ncdc, dtype=jnp.int32)[:, None] // dc
           == jnp.arange(128, dtype=jnp.int32)[None, :]).astype(jnp.float32)

    # ---- padded-VMEM-aware batch-tile selection -------------------------------
    per_row = (_pad128(ncdc) * od2d.dtype.itemsize              # out_digit (lane-dense)
               + 128 * 4                                        # labels: 1 -> 128 lanes, int32
               + _pad128(d) * reconstruction.dtype.itemsize     # reconstruction
               + _pad128(d) * image_flat.dtype.itemsize)        # image
    temp_row = 2 * _pad128(d) * 4                               # headroom for f32 temporaries
    fixed = 2 * _round_up(ncdc, 8) * 128 * 4                    # seg, double-buffered
    tb, vmem_cap = _pick_batch_tile(bs, per_row, temp_row, fixed, num_partitions)

    nb = pl.cdiv(bs, tb)                      # batch blocks
    spp = pl.cdiv(nb, num_partitions)         # grid steps per partition
    grid = (num_partitions, spp)

    def bidx(p, i):                           # clamp so DMAs stay in bounds; mask in-kernel
        return jnp.minimum(p * spp + i, nb - 1)

    kernel = functools.partial(
        _loss_kernel, m_p=m_p, m_m=m_m, lmbd=lmbd,
        batch_size=bs, tile_b=tb, num_classes=nc)

    part_shape = jax.ShapeDtypeStruct((num_partitions, 1, 1), jnp.float32)
    out_spec = pl.BlockSpec((1, 1, 1), lambda p, i: (p, 0, 0))

    margin_parts, recon_parts = pl.pallas_call(
        kernel,
        out_shape=(part_shape, part_shape),
        grid=grid,
        in_specs=[
            pl.BlockSpec((tb, ncdc), lambda p, i: (bidx(p, i), 0)),   # out_digit (lane-dense)
            pl.BlockSpec((tb, 1), lambda p, i: (bidx(p, i), 0)),      # labels
            pl.BlockSpec((tb, d), lambda p, i: (bidx(p, i), 0)),      # reconstruction
            pl.BlockSpec((tb, d), lambda p, i: (bidx(p, i), 0)),      # image (flattened)
            pl.BlockSpec((ncdc, 128), lambda p, i: (0, 0)),           # segment matrix (resident)
        ],
        out_specs=(out_spec, out_spec),
        scratch_shapes=[
            pltpu.VMEM((1, 128), jnp.float32),                        # margin partials (per lane)
            pltpu.VMEM((1, d), jnp.float32),                          # recon partials (per lane)
        ],
        compiler_params=pltpu.CompilerParams(
            dimension_semantics=("parallel", "arbitrary"),            # cores x batch-reduction
            vmem_limit_bytes=int(0.75 * vmem_cap),
        ),
    )(od2d, labels, reconstruction, image_flat, seg)

    inv_b = 1.0 / bs
    margin_l = jnp.sum(margin_parts) * inv_b
    recon_l = jnp.sum(recon_parts) * (2.0 * inv_b)
    total = margin_l + regularization_scale * recon_l
    return total, margin_l, recon_l


def _reference_forward(out_digit, reconstruction, target, image,
                       regularization_scale=0.0005, m_p=0.9, m_m=0.1, lmbd=0.5):
    bs = out_digit.shape[0]
    v_c = jnp.sqrt(jnp.sum(out_digit ** 2, axis=2))
    m1 = jnp.maximum(0.0, m_p - v_c) ** 2
    m0 = jnp.maximum(0.0, v_c - m_m) ** 2
    Lk = target * m1 + lmbd * (1.0 - target) * m0
    margin_l = jnp.mean(jnp.sum(Lk, axis=1))
    img = image.reshape(bs, -1)
    err = 2.0 * (reconstruction - img) ** 2
    recon_l = jnp.mean(jnp.sum(err, axis=1))
    return margin_l + regularization_scale * recon_l, margin_l, recon_l


def _run_case(key, batch, num_classes=10, caps_dim=16, c=1, h=16, w=16):
    k1, k2, k3, k4 = jax.random.split(key, 4)
    d = c * h * w
    out_digit = jax.random.normal(k1, (batch, num_classes, caps_dim),
                                  dtype=jnp.float32) * 0.3
    reconstruction = jax.random.uniform(k2, (batch, d), dtype=jnp.float32)
    image = jax.random.uniform(k3, (batch, c, h, w), dtype=jnp.float32)
    labels = jax.random.randint(k4, (batch,), 0, num_classes)
    target = jax.nn.one_hot(labels, num_classes, dtype=jnp.float32)

    total, margin, recon_l = loss_layer_forward(out_digit, reconstruction, target, image)
    total = jax.block_until_ready(total)
    margin = jax.block_until_ready(margin)
    recon_l = jax.block_until_ready(recon_l)

    ref_total, ref_margin, ref_recon = _reference_forward(
        out_digit, reconstruction, target, image)

    assert jnp.allclose(total, ref_total, rtol=1e-5, atol=1e-5)
    assert jnp.allclose(margin, ref_margin, rtol=1e-5, atol=1e-5)
    assert jnp.allclose(recon_l, ref_recon, rtol=1e-5, atol=1e-5)


if __name__ == "__main__":
    key = jax.random.PRNGKey(0)
    ka, kb = jax.random.split(key, 2)

    # Small base case (batch=2) and a slightly larger case that exercises
    # multi-block tiling, the ragged-tile mask, and both grid partitions.
    _run_case(ka, batch=2)
    _run_case(kb, batch=12)

    # TODO(synk): LossLayer.backprop is not implemented (forward-only spec); use jax.grad
    # on the forward (or a fused upstream loss) if gradients are needed.
    print("KERNEL_OK")
</pallas_src>

<mosaic_0001>
module attributes {stable_mosaic.version = 11 : i64} {
  func.func @_loss_kernel(%arg0: i32, %arg1: i32, %arg2: memref<2x160xf32, #tpu.memory_space<vmem>>, %arg3: memref<2x1xi32, #tpu.memory_space<vmem>>, %arg4: memref<2x256xf32, #tpu.memory_space<vmem>>, %arg5: memref<2x256xf32, #tpu.memory_space<vmem>>, %arg6: memref<160x128xf32, #tpu.memory_space<vmem>>, %arg7: memref<1x1x1xf32, #tpu.memory_space<vmem>>, %arg8: memref<1x1x1xf32, #tpu.memory_space<vmem>>, %arg9: memref<1x128xf32, #tpu.memory_space<vmem>>, %arg10: memref<1x256xf32, #tpu.memory_space<vmem>>) attributes {dimension_semantics = [#tpu.dimension_semantics<parallel>, #tpu.dimension_semantics<arbitrary>], iteration_bounds = array<i64: 2, 1>, scalar_prefetch = 0 : i64, scratch_operands = 2 : i64, tpu.core_type = #tpu.core_type<tc>, window_params = [{transform_indices = @transform_0, window_bounds = array<i64: 2, 160>}, {transform_indices = @transform_1, window_bounds = array<i64: 2, 1>}, {transform_indices = @transform_2, window_bounds = array<i64: 2, 256>}, {transform_indices = @transform_3, window_bounds = array<i64: 2, 256>}, {pipeline_mode = #tpu.pipeline_mode<synchronous>, transform_indices = @transform_4, window_bounds = array<i64: 160, 128>}, {transform_indices = @transform_5, window_bounds = array<i64: 1, 1, 1>}, {transform_indices = @transform_6, window_bounds = array<i64: 1, 1, 1>}]} {
    %c0_i32 = arith.constant 0 : i32
    %0 = arith.cmpi eq, %arg1, %c0_i32 : i32
    %1 = arith.extui %0 : i1 to i32
    %c0_i32_0 = arith.constant 0 : i32
    %2 = arith.cmpi ne, %1, %c0_i32_0 : i32
    scf.if %2 {
      %cst_30 = arith.constant 0.000000e+00 : f32
      %64 = vector.broadcast %cst_30 : f32 to vector<1x128xf32>
      %c0_31 = arith.constant 0 : index
      %c0_32 = arith.constant 0 : index
      %65 = vector.load %arg9[%c0_31, %c0_32] : memref<1x128xf32, #tpu.memory_space<vmem>>, vector<1x128xf32>
      tpu.vector_store %arg9[%c0_31, %c0_32], %64 {strides = array<i32>} : memref<1x128xf32, #tpu.memory_space<vmem>>, vector<1x128xf32>,
      %cst_33 = arith.constant 0.000000e+00 : f32
      %66 = vector.broadcast %cst_33 : f32 to vector<1x256xf32>
      %c0_34 = arith.constant 0 : index
      %c0_35 = arith.constant 0 : index
      %67 = vector.load %arg10[%c0_34, %c0_35] : memref<1x256xf32, #tpu.memory_space<vmem>>, vector<1x256xf32>
      tpu.vector_store %arg10[%c0_34, %c0_35], %66 {strides = array<i32>} : memref<1x256xf32, #tpu.memory_space<vmem>>, vector<1x256xf32>,
    } else {
    }
    %c1_i32 = arith.constant 1 : i32
    %3 = arith.muli %arg0, %c1_i32 : i32
    %4 = arith.addi %3, %arg1 : i32
    %c2_i32 = arith.constant 2 : i32
    %5 = arith.muli %4, %c2_i32 : i32
    %6 = tpu.iota {dimensions = array<i32: 0>} : vector<2x1xi32>
    %7 = vector.broadcast %5 : i32 to vector<2x1xi32>
    %8 = arith.addi %7, %6 : vector<2x1xi32>
    %c2_i32_1 = arith.constant 2 : i32
    %9 = vector.broadcast %c2_i32_1 : i32 to vector<2x1xi32>
    %10 = arith.cmpi slt, %8, %9 : vector<2x1xi32>
    %c0 = arith.constant 0 : index
    %c0_2 = arith.constant 0 : index
    %11 = vector.load %arg2[%c0, %c0_2] : memref<2x160xf32, #tpu.memory_space<vmem>>, vector<2x160xf32>
    %12 = arith.mulf %11, %11 : vector<2x160xf32>
    %c0_3 = arith.constant 0 : index
    %c0_4 = arith.constant 0 : index
    %13 = vector.load %arg6[%c0_3, %c0_4] : memref<160x128xf32, #tpu.memory_space<vmem>>, vector<160x128xf32>
    %cst = arith.constant dense<0.000000e+00> : vector<2x128xf32>
    %14 = tpu.matmul %12, %13, %cst {dimension_numbers = #tpu.dot_dimension_numbers<[1], [0], [0], [1], [0, 0, 1, 1], [], []>, precision = #tpu.contract_precision<fp32>} : vector<2x160xf32>, vector<160x128xf32>, vector<2x128xf32> -> vector<2x128xf32>
    %15 = math.sqrt %14 : vector<2x128xf32>
    %cst_5 = arith.constant 0.899999976 : f32
    %16 = vector.broadcast %cst_5 : f32 to vector<2x128xf32>
    %17 = arith.subf %16, %15 : vector<2x128xf32>
    %cst_6 = arith.constant 0.000000e+00 : f32
    %18 = vector.broadcast %cst_6 : f32 to vector<2x128xf32>
    %19 = arith.maximumf %18, %17 : vector<2x128xf32>
    %20 = arith.mulf %19, %19 : vector<2x128xf32>
    %cst_7 = arith.constant 1.000000e-01 : f32
    %21 = vector.broadcast %cst_7 : f32 to vector<2x128xf32>
    %22 = arith.subf %15, %21 : vector<2x128xf32>
    %cst_8 = arith.constant 0.000000e+00 : f32
    %23 = vector.broadcast %cst_8 : f32 to vector<2x128xf32>
    %24 = arith.maximumf %23, %22 : vector<2x128xf32>
    %25 = arith.mulf %24, %24 : vector<2x128xf32>
    %26 = tpu.iota {dimensions = array<i32: 1>} : vector<2x128xi32>
    %c0_9 = arith.constant 0 : index
    %c0_10 = arith.constant 0 : index
    %27 = vector.load %arg3[%c0_9, %c0_10] : memref<2x1xi32, #tpu.memory_space<vmem>>, vector<2x1xi32>
    %28 = vector.broadcast %27 : vector<2x1xi32> to vector<2x128xi32>
    %29 = arith.cmpi eq, %26, %28 : vector<2x128xi32>
    %30 = arith.extui %29 : vector<2x128xi1> to vector<2x128xi32>
    %31 = arith.sitofp %30 : vector<2x128xi32> to vector<2x128xf32>
    %cst_11 = arith.constant 5.000000e-01 : f32
    %32 = vector.broadcast %cst_11 : f32 to vector<2x128xf32>
    %33 = arith.mulf %32, %25 : vector<2x128xf32>
    %34 = arith.subf %20, %33 : vector<2x128xf32>
    %35 = arith.mulf %31, %34 : vector<2x128xf32>
    %36 = arith.addf %33, %35 : vector<2x128xf32>
    %c10_i32 = arith.constant 10 : i32
    %37 = vector.broadcast %c10_i32 : i32 to vector<2x128xi32>
    %38 = arith.cmpi slt, %26, %37 : vector<2x128xi32>
    %39 = vector.broadcast %10 : vector<2x1xi1> to vector<2x128xi1>
    %40 = arith.andi %39, %38 : vector<2x128xi1>
    %cst_12 = arith.constant 0.000000e+00 : f32
    %41 = vector.broadcast %cst_12 : f32 to vector<2x128xf32>
    %42 = arith.select %40, %36, %41 : vector<2x128xi1>, vector<2x128xf32>
    %c0_13 = arith.constant 0 : index
    %c0_14 = arith.constant 0 : index
    %43 = vector.load %arg9[%c0_13, %c0_14] : memref<1x128xf32, #tpu.memory_space<vmem>>, vector<1x128xf32>
    %cst_15 = arith.constant dense<0.000000e+00> : vector<128xf32>
    %44 = vector.multi_reduction <add>, %42, %cst_15 [0] : vector<2x128xf32> to vector<128xf32>
    %45 = vector.shape_cast %44 : vector<128xf32> to vector<1x128xf32>
    %46 = arith.addf %43, %45 : vector<1x128xf32>
    %c0_16 = arith.constant 0 : index
    %c0_17 = arith.constant 0 : index
    %47 = vector.load %arg9[%c0_16, %c0_17] : memref<1x128xf32, #tpu.memory_space<vmem>>, vector<1x128xf32>
    tpu.vector_store %arg9[%c0_16, %c0_17], %46 {strides = array<i32>} : memref<1x128xf32, #tpu.memory_space<vmem>>, vector<1x128xf32>,
    %c0_18 = arith.constant 0 : index
    %c0_19 = arith.constant 0 : index
    %48 = vector.load %arg4[%c0_18, %c0_19] : memref<2x256xf32, #tpu.memory_space<vmem>>, vector<2x256xf32>
    %c0_20 = arith.constant 0 : index
    %c0_21 = arith.constant 0 : index
    %49 = vector.load %arg5[%c0_20, %c0_21] : memref<2x256xf32, #tpu.memory_space<vmem>>, vector<2x256xf32>
    %50 = arith.subf %48, %49 : vector<2x256xf32>
    %c0_22 = arith.constant 0 : index
    %c0_23 = arith.constant 0 : index
    %51 = vector.load %arg10[%c0_22, %c0_23] : memref<1x256xf32, #tpu.memory_space<vmem>>, vector<1x256xf32>
    %52 = arith.mulf %50, %50 : vector<2x256xf32>
    %cst_24 = arith.constant 0.000000e+00 : f32
    %53 = vector.shape_cast %10 : vector<2x1xi1> to vector<2x1xi1>
    %54 = vector.broadcast %53 : vector<2x1xi1> to vector<2x256xi1>
    %55 = vector.broadcast %cst_24 : f32 to vector<2x256xf32>
    %56 = arith.select %54, %52, %55 : vector<2x256xi1>, vector<2x256xf32>
    %cst_25 = arith.constant dense<0.000000e+00> : vector<256xf32>
    %57 = vector.multi_reduction <add>, %56, %cst_25 [0] : vector<2x256xf32> to vector<256xf32>
    %58 = vector.shape_cast %57 : vector<256xf32> to vector<1x256xf32>
    %59 = arith.addf %51, %58 : vector<1x256xf32>
    %c0_26 = arith.constant 0 : index
    %c0_27 = arith.constant 0 : index
    %60 = vector.load %arg10[%c0_26, %c0_27] : memref<1x256xf32, #tpu.memory_space<vmem>>, vector<1x256xf32>
    tpu.vector_store %arg10[%c0_26, %c0_27], %59 {strides = array<i32>} : memref<1x256xf32, #tpu.memory_space<vmem>>, vector<1x256xf32>,
    %c0_i32_28 = arith.constant 0 : i32
    %61 = arith.cmpi eq, %arg1, %c0_i32_28 : i32
    %62 = arith.extui %61 : i1 to i32
    %c0_i32_29 = arith.constant 0 : i32
    %63 = arith.cmpi ne, %62, %c0_i32_29 : i32
    scf.if %63 {
      %c0_30 = arith.constant 0 : index
      %c0_31 = arith.constant 0 : index
      %64 = vector.load %arg9[%c0_30, %c0_31] : memref<1x128xf32, #tpu.memory_space<vmem>>, vector<1x128xf32>
      %65 = vector.shape_cast %64 : vector<1x128xf32> to vector<1x1x128xf32>
      %cst_32 = arith.constant dense<0.000000e+00> : vector<1xf32>
      %66 = vector.multi_reduction <add>, %65, %cst_32 [1, 2] : vector<1x1x128xf32> to vector<1xf32>
      %67 = vector.shape_cast %66 : vector<1xf32> to vector<1x1x1xf32>
      %68 = vector.extract %67[0, 0, 0] : f32 from vector<1x1x1xf32>
      %69 = vector.broadcast %68 : f32 to vector<1x1x1xf32>
      %c0_33 = arith.constant 0 : index
      %c0_34 = arith.constant 0 : index
      %c0_35 = arith.constant 0 : index
      %70 = vector.load %arg7[%c0_33, %c0_34, %c0_35] : memref<1x1x1xf32, #tpu.memory_space<vmem>>, vector<1x1x1xf32>
      tpu.vector_store %arg7[%c0_33, %c0_34, %c0_35], %69 {strides = array<i32>} : memref<1x1x1xf32, #tpu.memory_space<vmem>>, vector<1x1x1xf32>,
      %c0_36 = arith.constant 0 : index
      %c0_37 = arith.constant 0 : index
      %71 = vector.load %arg10[%c0_36, %c0_37] : memref<1x256xf32, #tpu.memory_space<vmem>>, vector<1x256xf32>
      %72 = vector.shape_cast %71 : vector<1x256xf32> to vector<1x1x256xf32>
      %cst_38 = arith.constant dense<0.000000e+00> : vector<1xf32>
      %73 = vector.multi_reduction <add>, %72, %cst_38 [1, 2] : vector<1x1x256xf32> to vector<1xf32>
      %74 = vector.shape_cast %73 : vector<1xf32> to vector<1x1x1xf32>
      %75 = vector.extract %74[0, 0, 0] : f32 from vector<1x1x1xf32>
      %76 = vector.broadcast %75 : f32 to vector<1x1x1xf32>
      %c0_39 = arith.constant 0 : index
      %c0_40 = arith.constant 0 : index
      %c0_41 = arith.constant 0 : index
      %77 = vector.load %arg8[%c0_39, %c0_40, %c0_41] : memref<1x1x1xf32, #tpu.memory_space<vmem>>, vector<1x1x1xf32>
      tpu.vector_store %arg8[%c0_39, %c0_40, %c0_41], %76 {strides = array<i32>} : memref<1x1x1xf32, #tpu.memory_space<vmem>>, vector<1x1x1xf32>,
    } else {
    }
    return
  }
  func.func @transform_0(%arg0: i32, %arg1: i32) -> (i32, i32) {
    %c1_i32 = arith.constant 1 : i32
    %0 = arith.muli %arg0, %c1_i32 : i32
    %1 = arith.addi %0, %arg1 : i32
    %c0_i32 = arith.constant 0 : i32
    %2 = arith.minsi %1, %c0_i32 : i32
    %c0_i32_0 = arith.constant 0 : i32
    %c0_i32_1 = arith.constant 0 : i32
    return %2, %c0_i32_0 : i32, i32
  }
  func.func @transform_1(%arg0: i32, %arg1: i32) -> (i32, i32) {
    %c1_i32 = arith.constant 1 : i32
    %0 = arith.muli %arg0, %c1_i32 : i32
    %1 = arith.addi %0, %arg1 : i32
    %c0_i32 = arith.constant 0 : i32
    %2 = arith.minsi %1, %c0_i32 : i32
    %c0_i32_0 = arith.constant 0 : i32
    %c0_i32_1 = arith.constant 0 : i32
    return %2, %c0_i32_0 : i32, i32
  }
  func.func @transform_2(%arg0: i32, %arg1: i32) -> (i32, i32) {
    %c1_i32 = arith.constant 1 : i32
    %0 = arith.muli %arg0, %c1_i32 : i32
    %1 = arith.addi %0, %arg1 : i32
    %c0_i32 = arith.constant 0 : i32
    %2 = arith.minsi %1, %c0_i32 : i32
    %c0_i32_0 = arith.constant 0 : i32
    %c0_i32_1 = arith.constant 0 : i32
    return %2, %c0_i32_0 : i32, i32
  }
  func.func @transform_3(%arg0: i32, %arg1: i32) -> (i32, i32) {
    %c1_i32 = arith.constant 1 : i32
    %0 = arith.muli %arg0, %c1_i32 : i32
    %1 = arith.addi %0, %arg1 : i32
    %c0_i32 = arith.constant 0 : i32
    %2 = arith.minsi %1, %c0_i32 : i32
    %c0_i32_0 = arith.constant 0 : i32
    %c0_i32_1 = arith.constant 0 : i32
    return %2, %c0_i32_0 : i32, i32
  }
  func.func @transform_4(%arg0: i32, %arg1: i32) -> (i32, i32) {
    %c0_i32 = arith.constant 0 : i32
    %c0_i32_0 = arith.constant 0 : i32
    %c0_i32_1 = arith.constant 0 : i32
    return %c0_i32, %c0_i32_0 : i32, i32
  }
  func.func @transform_5(%arg0: i32, %arg1: i32) -> (i32, i32, i32) {
    %c0_i32 = arith.constant 0 : i32
    %c0_i32_0 = arith.constant 0 : i32
    %c0_i32_1 = arith.constant 0 : i32
    return %arg0, %c0_i32, %c0_i32_0 : i32, i32, i32
  }
  func.func @transform_6(%arg0: i32, %arg1: i32) -> (i32, i32, i32) {
    %c0_i32 = arith.constant 0 : i32
    %c0_i32_0 = arith.constant 0 : i32
    %c0_i32_1 = arith.constant 0 : i32
    return %arg0, %c0_i32, %c0_i32_0 : i32, i32, i32
  }
}

</mosaic_0001>

<bundles_post_ra>
// kernel: tpu_custom_call.1
= control target key start
LH: loop header
LB: loop body
LE: loop exit
PB: predicated region body
PF: predicated region fallthrough
CT: control target
= control target key end

     0   :  { %12 = vsyncpa [#allocation5], 0  ;;  %s2511_s0 = inlined_call_operand.hbm [shape: f32[2,160], index: 0, kind: input, shape index: {}]   ;;  %s2512_s1 = inlined_call_operand.vmem [shape: s32[2,1], index: 1, kind: input, shape index: {}]   ;;  %s2513_s2 = inlined_call_operand.vmem [shape: f32[2,256], index: 2, kind: input, shape index: {}]   ;;  %s2514_s3 = inlined_call_operand.vmem [shape: f32[2,256], index: 3, kind: input, shape index: {}]   ;;  %s2515_s4 = inlined_call_operand.hbm [shape: f32[160,128], index: 4, kind: input, shape index: {}]   ;;  %s2516_s5 = inlined_call_operand.vmem [shape: f32[2,1,1], index: 5, kind: output, shape index: {0}]   ;;  %s2517_s6 = inlined_call_operand.vmem [shape: f32[2,1,1], index: 6, kind: output, shape index: {1}]  }
   0x1   :  { %14 = vsyncpa [#allocation5 + $0x1], 0 }
   0x2   :  { %15 = vsyncpa [#allocation7], 0  ;;  %s1929_s21 = smov 0   ;;  %s1931_s22 = smov 0  }
   0x3   :  { %s1933_s23 = smov 0   ;;  %s1935_s24 = smov 0  }
   0x4   :  { %s1937_s25 = smov 0  }
   0x5 LB: > { %s1472_s26 = sadd.s32 4294967295, %s1883_s25   ;;  %p59_p0 = scmp.ne.s32.totalorder %s1871_s22, %s1867_s21  ;;  %s1883_s25 = sphi %s1937_s25, %s21_s25   ;;  %s1879_s24 = sphi %s1935_s24, %s2557_s24   ;;  %s1875_s23 = sphi %s1933_s23, %s2556_s23   ;;  %s1871_s22 = sphi %s1931_s22, %s2501_s22   ;;  %s1867_s21 = sphi %s1929_s21, %s2555_s21  }
   0x6   : > { %p1954_p1 = scmp.eq.s32.totalorder %s1472_s26, 0  ;;  %p1474_p2 = scmp.ge.s32.totalorder %s1883_s25, 1 }
   0x7   : > { %p239_p3 = scmp.lt.s32.totalorder %s1883_s25, 3  ;;  %s1885_s30 = smov [#allocation6]  }
   0x8   : > { %s2534_s27 = scalar_select %p1954_p1, 1, 0 }
   0x9   : > { %p1962_p4 = por %p1954_p1, %p59_p0  ;;  %p1966_p5 = pnand %p1474_p2, %p239_p3 }
   0xa   : > { %s251_s7 = sshll.u32 %s1885_s30, 4  ;;  %s33_s9 = sadd.s32 1, %s1879_s24  ;;  %s252_s7 = int_to_ptr.vmem [resolvable:$true] %s251_s7 }
   0xb   : > { %s2535_s28 = scalar_select %p1962_p4, 1, 0 }
   0xc   : > { %s2536_s29 = scalar_select %p1966_p5, 1, 0 }
   0xd   : > { %p1704_p6 = pneg %p1966_p5  ;;  %s1774_s12 = scalar_lea.hbm %s2515_s4, 2560 }
   0xe   : > { %p1775_p8 = scmp.ne.s32.totalorder %s2515_s4, %s1774_s12  ;;  %p1781_p12 = scmp.lt.u32.totalorder %s1774_s12, %s2515_s4 }
   0xf   : > { %p1974_p7 = pnand %p1704_p6, %p1954_p1 }
  0x11   : > { %p1776_p9 = pneg %p1974_p7 }
  0x13   : > { %p1777_p10 = pnand %p1776_p9, %p1775_p8 }
  0x15   : > { %p1778_p11 = pneg %p1777_p10 }
  0x17   : > { %p1783_p13 = pnand %p1781_p12, %p1778_p11 }
  0x19   : > { %1786 = shalt.err (!%p1783_p13)
}
  0x1a   : > { %s1787_s17 = scalar_lea.vmem %s252_s7, 2560  ;;  %p1795_p6 = scmp.lt.s32.totalorder %s252_s7, %s252_s7 }
  0x1b   : > { %p1788_p0 = scmp.ne.s32.totalorder %s252_s7, %s1787_s17  ;;  %p1796_p1 = scmp.lt.s32.totalorder %s1787_s17, %s1787_s17 }
  0x1d   : > { %p1790_p2 = pnand %p1788_p0, %p1776_p9  ;;  %p1797_p4 = por %p1796_p1, %p1795_p6 }
  0x1f   : > { %p1791_p3 = pneg %p1790_p2 }
  0x21   : > { %p1798_p5 = pnand %p1797_p4, %p1791_p3 }
  0x23   : > { %1801 = shalt.err (!%p1798_p5)
}
  0x24   : > { %s1886_s18 = smov 128   ;;  %s1887_s19 = smov 8  }
  0x25   : > { %1707 = dma.hbm_to_vmem [thread:$0]  (!%p1974_p7), %s2515_s4, 2560, %s252_s7, [#allocation7], %s1886_s18, %s1886_s18, %s1887_s19  }
  0x26   : > { %p35_p8 = scmp.ge.s32.totalorder %s33_s9, 2  ;;  %p1864_p10 = scmp.ne.s32.totalorder %s1871_s22, 0 }
  0x27   : > { %p54_p9 = scmp.eq.s32.totalorder %s1883_s25, 0  ;;  %p1713_p1 = scmp.lt.s32.totalorder %s1883_s25, 2 }
  0x28   : > { %s2559_s9 = smov (%p35_p8, %s33_s9), 0  ;;  %s1888_s26 = smov [#allocation4]  }
  0x29   : > { %p55_p11 = por %p1864_p10, %p54_p9  ;;  %s280_s30 = sshll.u32 %s1888_s26, 4  ;;  %s281_s30 = int_to_ptr.vmem [resolvable:$true] %s280_s30 }
  0x2a   : > { %s1802_s12 = scalar_lea.hbm %s2511_s0, 64 }
  0x2b   : > { %p2000_p4 = pnand %p1713_p1, %p55_p11  ;;  %p1803_p5 = scmp.ne.s32.totalorder %s2511_s0, %s1802_s12 }
  0x2c   : > { %p1809_p0 = scmp.lt.u32.totalorder %s1802_s12, %s1802_s12  ;;  %p1811_p2 = scmp.lt.u32.totalorder %s1802_s12, %s2511_s0 }
  0x2d   : > { %s2538_s10 = scalar_select %p2000_p4, 1, 0 }
  0x2e   : > { %p1804_p7 = pneg %p2000_p4  ;;  %p1812_p3 = por %p1811_p2, %p1809_p0 }
  0x30   : > { %p1805_p12 = pnand %p1804_p7, %p1803_p5 }
  0x32   : > { %p1806_p13 = pneg %p1805_p12 }
  0x34   : > { %p1813_p6 = pnand %p1812_p3, %p1806_p13 }
  0x36   : > { %1816 = shalt.err (!%p1813_p6)
}
  0x37   : > { %s1817_s16 = scalar_lea.vmem %s281_s30, 64  ;;  %s1824_s17 = scalar_lea.vmem %s281_s30, 128 }
  0x38   : > { %p1818_p8 = scmp.ne.s32.totalorder %s281_s30, %s1817_s16  ;;  %p1825_p11 = scmp.lt.s32.totalorder %s281_s30, %s281_s30 }
  0x39   : > { %p1826_p1 = scmp.lt.s32.totalorder %s1824_s17, %s1817_s16 }
  0x3a   : > { %p1820_p10 = pnand %p1818_p8, %p1804_p7 }
  0x3b   : > { %p1827_p4 = por %p1826_p1, %p1825_p11 }
  0x3c   : > { %p1821_p9 = pneg %p1820_p10 }
  0x3e   : > { %p1828_p5 = pnand %p1827_p4, %p1821_p9 }
  0x40   : > { %1831 = shalt.err (!%p1828_p5)
}
  0x41   : > { %p2539_p12 = scmp.ne.s32.totalorder %s2538_s10, 0  ;;  %p2540_p0 = scmp.ne.s32.totalorder %s2536_s29, 0 }
  0x42   : > { %s332_s20 = sand.u32 (!%p2540_p0), 1, %s1871_s22   ;;  %p2541_p7 = scmp.ne.s32.totalorder (!%p2540_p0), %s2535_s28, 0 }
  0x43   : > { %1711 = dma.hbm_to_vmem [thread:$0]  (!%p2539_p12), %s2511_s0, 64, %s281_s30, [#allocation5]  }
  0x44   : > { %330 = sbr.rel (%p2540_p0) target bundleno = 679 (0x2a7), region = 40  ;;  %s2023_s21 = sshll.u32 (!%p2540_p0), %s332_s20, 2 }
  0x45   : > { %s333_s26 = scalar_lea.sflag (!%p2540_p0), [#allocation5], %s332_s20  ;;  %s336_s11 = scalar_lea.vmem (!%p2540_p0), [#allocation4], %s2023_s21 }
  0x4b   : > { %1857 = dma.done.wait (%p2541_p7), %s333_s26, 64  }
  0x4c   : > { %1859 = vsyncadd (%p2541_p7), %s333_s26, 4294967232  ;;  %p2542_p4 = scmp.ne.s32.totalorder %s2534_s27, 0 }
  0x4e   : > { %1861 = dma.done.wait (%p2542_p4), [#allocation7], 2560  }
  0x4f   : > { %1863 = vsyncadd (%p2542_p4), [#allocation7], 4294964736  ;;  %v1889_v0 = vmov 0.0|0.0   ;;  %p397_p13 = scmp.lt.s32.totalorder %s1875_s23, 0  ;;  %v1890_v1 = vmov 0   ;;  %v2038_v2 = vld [vmem:[#allocation6] sm:$0xff]  ;;  %v2523_v13 = vlaneseq }
  0x50   : > { %1505 = vmatprep.subr.bf16.mxu1 %v1889_v0  ;;  %1595 = vmatprep.subr.bf16.mxu0 %v1889_v0  ;;  %v2040_v3 = vld [vmem:[#allocation6 + $0x8] sm:$0xff]  ;;  %v2042_v4 = vld [vmem:[#allocation6 + $0x10] sm:$0xff]  ;;  %v487_v5 = vand.u32 4294901760, %v2038_v2  ;;  %v2048_v7 = vld [vmem:[#allocation6 + $0x18] sm:$0xff]  ;;  %v1891_v14 = vmov 1983009808  }
  0x51   : > { %1771 = vset.pattern.permute.xlu0 %v1890_v1  ;;  %s398_s29 = scalar_select %p397_p13, %s1875_s23, 0  ;;  %v490_v6 = vand.u32 4294901760, %v2040_v3  ;;  %v493_v8 = vand.u32 4294901760, %v2042_v4  ;;  %v496_v9 = vand.u32 4294901760, %v2048_v7  ;;  %v2052_v10 = vld [vmem:[#allocation6 + $0x20] sm:$0xff]  ;;  %v2054_v11 = vld [vmem:[#allocation6 + $0x28] sm:$0xff]  ;;  %v475_v15 = vunpack.c.l.s4 %v1891_v14 }
  0x52   : > { %v499_v17 = vand.u32 4294901760, %v2052_v10  ;;  %v502_v18 = vand.u32 4294901760, %v2054_v11  ;;  %v2078_v19 = vld [vmem:[#allocation6 + $0x30] sm:$0xff]  ;;  %v2080_v20 = vld [vmem:[#allocation6 + $0x38] sm:$0xff]  ;;  %v2083_v22 = vshrl.u32 %v2523_v13, 7  ;;  %v2097_v27 = vld [vmem:[#allocation6 + $0x40] sm:$0xff]  ;;  %v2163_v52 = vsub.f32 %v2038_v2, %v487_v5 }
  0x53   : > { %s2561_s29 = smov (!%p397_p13, %s398_s29), 0  ;;  %v2060_v12 = vpack.c.bf16 %v490_v6, %v487_v5  ;;  %v2072_v16 = vpack.c.bf16 %v496_v9, %v493_v8  ;;  %v476_v23 = vunpack.c.0.s8 %v475_v15  ;;  %v505_v25 = vand.u32 4294901760, %v2078_v19  ;;  %v2099_v28 = vld [vmem:[#allocation6 + $0x48] sm:$0xff]  ;;  %v451_v29 = vld [vmem:[%s336_s11] sm:$0xf]  ;;  %v2118_v34 = vld [vmem:[#allocation6 + $0x50] sm:$0xff] }
  0x54   : > { %s1486_s27 = sshll.u32 %s2561_s29, 1  ;;  %v2091_v24 = vpack.c.bf16 %v502_v18, %v499_v17  ;;  %v508_v26 = vand.u32 4294901760, %v2080_v20  ;;  %v511_v32 = vand.u32 4294901760, %v2097_v27  ;;  %v514_v33 = vand.u32 4294901760, %v2099_v28  ;;  %v2120_v35 = vld [vmem:[#allocation6 + $0x58] sm:$0xff]  ;;  %v2135_v41 = vld [vmem:[#allocation6 + $0x60] sm:$0xff] }
  0x55   : > { %s402_s10 = scalar_lea.vmem %s2512_s1, %s1486_s27  ;;  %1507 = vmatpush1.bf16.msra.mxu1 %v2060_v12  ;;  %1597 = vmatpush1.bf16.msra.mxu0 %v2060_v12  ;;  %v2104_v30 = vsub.s32 %v476_v23, %v2083_v22  ;;  %v452_v36 = vmul.f32 %v451_v29, %v451_v29  ;;  %v517_v39 = vand.u32 4294901760, %v2118_v34  ;;  %v2533_v40 = vand.u32 4294901760, %v2120_v35  ;;  %v2137_v42 = vld [vmem:[#allocation6 + $0x68] sm:$0xff]  ;;  %v2153_v49 = vld [vmem:[#allocation6 + $0x70] sm:$0xff]  ;;  %v2155_v50 = vld [vmem:[#allocation6 + $0x78] sm:$0xff]  ;;  %s1503_s8 = sshll.u32 %s2561_s29, 2 }
  0x56   : > { %1508 = vmatprep.subr.bf16.mxu1 %v1889_v0  ;;  %1598 = vmatprep.subr.bf16.mxu0 %v1889_v0  ;;  %v1207_v21 = vld [vmem:[%s402_s10] sm:$0x3]  ;;  %v2112_v31 = vpack.c.bf16 %v508_v26, %v505_v25  ;;  %v2129_v38 = vpack.c.bf16 %v514_v33, %v511_v32  ;;  %vm483_vm0 = vcmask 261120   ;;  %v2532_v46 = vand.u32 4294901760, %v2135_v41  ;;  %v2182_v58 = vld [vmem:[#allocation6 + $0x80] sm:$0xff]  ;;  %v2184_v59 = vld [vmem:[#allocation6 + $0x88] sm:$0xff]  ;;  %s413_s13 = scalar_lea.vmem %s2513_s2, %s1503_s8  ;;  %s424_s16 = scalar_lea.vmem %s2514_s3, %s1503_s8 }
  0x57   : > { %1209 = vperm.xlu0 %1771, %v1207_v21   ;;  %v480_v37 = vrot.slane %v452_v36, %v2104_v30  ;;  %v2145_v45 = vpack.c.bf16 %v2533_v40, %v517_v39  ;;  %v2531_v47 = vand.u32 4294901760, %v2137_v42  ;;  %v2168_v53 = vsub.f32 %v2040_v3, %v490_v6  ;;  %v2213_v5 = vld [vmem:[#allocation6 + $0x90] sm:$0xff]  ;;  %s1497_s17 = sshll.u32 %s1875_s23, 1  ;;  %p428_p2 = scmp.lt.s32.totalorder %s1875_s23, 1 }
  0x58   : > { %v2530_v56 = vand.u32 4294901760, %v2153_v49  ;;  %v2527_v57 = vand.u32 4294901760, %v2155_v50  ;;  %v2192_v61 = vsub.f32 %v2042_v4, %v493_v8  ;;  %v2198_v63 = vsub.f32 %v2048_v7, %v496_v9  ;;  %v2219_v9 = vld [vmem:[#allocation6 + $0x98] sm:$0xff] }
  0x59   : > { %1510 = vmatpush1.bf16.msra.mxu1 %v2072_v16  ;;  %1600 = vmatpush1.bf16.msra.mxu0 %v2072_v16  ;;  %v481_v43 = vcombine.high %v480_v37, %v480_v37  ;;  %v2170_v54 = vand.u32 4294901760, %v480_v37  ;;  %v2178_v55 = vpack.c.bf16 %v2531_v47, %v2532_v46  ;;  %v2526_v1 = vand.u32 4294901760, %v2182_v58  ;;  %v1234_v13 = vld [vmem:[%s413_s13] sm:$0xf]  ;;  %s2563_s23 = smov (!%p428_p2, %s1875_s23), 1 }
  0x5a   : > { %1511 = vmatprep.subr.bf16.mxu1 %v1889_v0  ;;  %1601 = vmatprep.subr.bf16.mxu0 %v1889_v0  ;;  %v2525_v2 = vand.u32 4294901760, %v2184_v59  ;;  %v2211_v4 = vpack.c.bf16 %v2527_v57, %v2530_v56  ;;  %v589_v7 = vand.u32 4294901760, %v2163_v52  ;;  %v596_v8 = vand.u32 4294901760, %v2168_v53  ;;  %s430_s20 = scalar_lea.vmem %s2516_s5, %s2563_s23  ;;  %s433_s29 = scalar_lea.vmem %s2517_s6, %s2563_s23 }
  0x5b   : > { %v484_v44 = vsel %vm483_vm0, %v481_v43, 0  ;;  %v2203_v3 = vsub.f32 %v480_v37, %v2170_v54  ;;  %v2225_v14 = vsub.f32 %v2052_v10, %v499_v17  ;;  %v2230_v15 = vsub.f32 %v2054_v11, %v502_v18 }
  0x5c   : > { %v2149_v48 = vand.u32 4294901760, %v484_v44  ;;  %v2529_v21 = vand.u32 4294901760, %v2213_v5  ;;  %v603_v29 = vand.u32 4294901760, %v2192_v61  ;;  %v610_v36 = vand.u32 4294901760, %v2198_v63 }
  0x5d   : > { %1513 = vmatpush1.bf16.msra.mxu1 %v2091_v24  ;;  %1603 = vmatpush1.bf16.msra.mxu0 %v2091_v24  ;;  %v578_v23 = vand.u32 4294901760, %v2203_v3  ;;  %v2242_v10 = vpack.c.bf16 %v2525_v2, %v2526_v1  ;;  %v2528_v11 = vand.u32 4294901760, %v2219_v9  ;;  %v590_v17 = vsub.f32 %v2163_v52, %v589_v7  ;;  %v1235_v2 = vld [vmem:[%s424_s16] sm:$0xf] }
  0x5e   : > { %1514 = vmatprep.subr.bf16.mxu1 %v1889_v0  ;;  %1604 = vmatprep.subr.bf16.mxu0 %v1889_v0  ;;  %v2158_v51 = vsub.f32 %v484_v44, %v2149_v48  ;;  %v597_v18 = vsub.f32 %v2168_v53, %v596_v8  ;;  %v2258_v37 = vsub.f32 %v2078_v19, %v505_v25  ;;  %v617_v43 = vand.u32 4294901760, %v2225_v14 }
  0x5f   : > { %v2264_v44 = vsub.f32 %v2080_v20, %v508_v26  ;;  %v2275_v19 = vpack.c.bf16 %v2528_v11, %v2529_v21  ;;  %v591_v25 = vand.u32 4294901760, %v590_v17  ;;  %v624_v26 = vand.u32 4294901760, %v2230_v15 }
  0x60   : > { %v572_v60 = vand.u32 4294901760, %v2158_v51  ;;  %v598_v20 = vand.u32 4294901760, %v597_v18  ;;  %v2283_v1 = vsub.f32 %v2097_v27, %v511_v32  ;;  %v2288_v57 = vsub.f32 %v2099_v28, %v514_v33 }
  0x61   : > { %1516 = vmatpush1.bf16.msra.mxu1 %v2112_v31  ;;  %1606 = vmatpush1.bf16.msra.mxu0 %v2112_v31  ;;  %v1626_v11 = vpack.c.bf16 %v596_v8, %v589_v7  ;;  %v618_v17 = vsub.f32 %v2225_v14, %v617_v43  ;;  %v1236_v47 = vsub.f32 %v1234_v13, %v1235_v2  ;;  %v631_v32 = vand.u32 4294901760, %v2258_v37 }
  0x62   : > { %1517 = vmatprep.subr.bf16.mxu1 %v1889_v0  ;;  %1607 = vmatprep.subr.bf16.mxu0 %v1889_v0  ;;  %v573_v62 = vsub.f32 %v2158_v51, %v572_v60  ;;  %v1536_v46 = vpack.c.bf16 %v598_v20, %v591_v25  ;;  %v625_v27 = vsub.f32 %v2230_v15, %v624_v26  ;;  %v638_v40 = vand.u32 4294901760, %v2264_v44 }
  0x63   : > { %959 = vmatprep.mubr.f32.mxu0 %v572_v60  ;;  %v579_v60 = vsub.f32 %v2203_v3, %v578_v23  ;;  %v1238_v28 = vmul.f32 %v1236_v47, %v1236_v47  ;;  %v2301_v13 = vsub.f32 %v2118_v34, %v517_v39  ;;  %v2543_v33 = vand.u32 4294901760, %v2120_v35 }
  0x64   : > { %v574_v6 = vand.u32 4294901760, %v573_v62  ;;  %v604_v62 = vsub.f32 %v2192_v61, %v603_v29  ;;  %v1629_v7 = vpack.c.bf16 %v610_v36, %v603_v29  ;;  %v619_v8 = vand.u32 4294901760, %v618_v17 }
  0x65   : > { %1519 = vmatpush1.bf16.msra.mxu1 %v2129_v38  ;;  %1609 = vmatpush1.bf16.msra.mxu0 %v2129_v38  ;;  %v580_v18 = vand.u32 4294901760, %v579_v60  ;;  %v2306_v2 = vsub.f32 %v2120_v35, %v2543_v33  ;;  %v645_v60 = vand.u32 4294901760, %v2283_v1  ;;  %v2311_v47 = vrot.slane %v1238_v28, %v2104_v30 }
  0x66   : > { %1520 = vmatprep.subr.bf16.mxu1 %v1889_v0  ;;  %1610 = vmatprep.subr.bf16.mxu0 %v1889_v0  ;;  %v605_v21 = vand.u32 4294901760, %v604_v62  ;;  %v652_v62 = vand.u32 4294901760, %v2288_v57  ;;  %v626_v39 = vand.u32 4294901760, %v625_v27  ;;  %v639_v35 = vsub.f32 %v2264_v44, %v638_v40 }
  0x67   : > { %575 = vmatprep.mubr.f32.mxu1 %v574_v6  ;;  %v611_v6 = vsub.f32 %v2198_v63, %v610_v36  ;;  %v2545_v30 = vand.u32 4294901760, %v2137_v42  ;;  %v666_v17 = vand.u32 4294901760, %v2306_v2  ;;  %v1635_v27 = vpack.c.bf16 %v638_v40, %v631_v32 }
  0x68   : > { %v653_v36 = vsub.f32 %v2288_v57, %v652_v62  ;;  %v640_v20 = vand.u32 4294901760, %v639_v35  ;;  %vm1224_vm2 = vcmask 1041408   ;;  %vm1294_vm4 = vcmask 1040384  }
  0x69   : > { %1522 = vmatpush1.bf16.msra.mxu1 %v2145_v45  ;;  %1612 = vmatpush1.bf16.msra.mxu0 %v2145_v45  ;;  %v612_v56 = vand.u32 4294901760, %v611_v6  ;;  %v632_v6 = vsub.f32 %v2258_v37, %v631_v32  ;;  %v2549_v32 = vand.u32 4294901760, %v2184_v59  ;;  %vm1306_vm10 = vcmask 0  }
  0x6a   : > { %1523 = vmatprep.subr.bf16.mxu1 %v1889_v0  ;;  %1613 = vmatprep.subr.bf16.mxu0 %v1889_v0  ;;  %v654_v33 = vand.u32 4294901760, %v653_v36 }
  0x6b   : > { %v1539_v34 = vpack.c.bf16 %v612_v56, %v605_v21  ;;  %v1632_v56 = vpack.c.bf16 %v624_v26, %v617_v43  ;;  %v646_v21 = vsub.f32 %v2283_v1, %v645_v60  ;;  %v633_v25 = vand.u32 4294901760, %v632_v6 }
  0x6c   : > { %v2547_v26 = vand.u32 4294901760, %v2155_v50  ;;  %v2359_v6 = vsub.f32 %v2184_v59, %v2549_v32  ;;  %v2550_v59 = vand.u32 4294901760, %v2213_v5 }
  0x6d   : > { %1525 = vmatpush1.bf16.msra.mxu1 %v2178_v55  ;;  %1615 = vmatpush1.bf16.msra.mxu0 %v2178_v55  ;;  %v647_v28 = vand.u32 4294901760, %v646_v21 }
  0x6e   : > { %1526 = vmatprep.subr.bf16.mxu1 %v1889_v0  ;;  %1616 = vmatprep.subr.bf16.mxu0 %v1889_v0 }
  0x6f   : > { %v1548_v35 = vpack.c.bf16 %v654_v33, %v647_v28 }
  0x71   : > { %1528 = vmatpush1.bf16.msra.mxu1 %v2211_v4  ;;  %1618 = vmatpush1.bf16.msra.mxu0 %v2211_v4 }
  0x72   : > { %1529 = vmatprep.subr.bf16.mxu1 %v1889_v0  ;;  %1619 = vmatprep.subr.bf16.mxu0 %v1889_v0 }
  0x75   : > { %1531 = vmatpush1.bf16.msra.mxu1 %v2242_v10  ;;  %1621 = vmatpush1.bf16.msra.mxu0 %v2242_v10 }
  0x76   : > { %1532 = vmatprep.subr.bf16.mxu1 %v1889_v0  ;;  %1622 = vmatprep.subr.bf16.mxu0 %v1889_v0 }
  0x79   : > { %1534 = vmatpush1.bf16.msra.mxu1 %v2275_v19  ;;  %1624 = vmatpush1.bf16.msra.mxu0 %v2275_v19 }
  0x7a   : > { %1535 = vmatprep.subr.bf16.mxu1 %v1889_v0  ;;  %1625 = vmatprep.subr.bf16.mxu0 %v1889_v0 }
  0x7c   : > { %581 = vmatmul.mubr.f32.vlgmr.msra.gmra.mrb[0].mxu1 %v580_v18  ;;  %963 = vmatmul.mubr.f32.vlgmr.msra.gmra.mrb[0].mxu0 %v578_v23  ;;  %v2544_v23 = vand.u32 4294901760, %v2135_v41  ;;  %v2343_v18 = vsub.f32 %v2155_v50, %v2547_v26  ;;  %v2548_v50 = vand.u32 4294901760, %v2182_v58 }
  0x7d   : > { %1537 = vmatpush1.bf16.msra.mxu1 %v1536_v46  ;;  %1627 = vmatpush1.bf16.msra.mxu0 %v1626_v11  ;;  %v2325_v46 = vsub.f32 %v2137_v42, %v2545_v30  ;;  %v659_v11 = vand.u32 4294901760, %v2301_v13  ;;  %v2546_v42 = vand.u32 4294901760, %v2153_v49 }
  0x7e   : > { %1538 = vmatprep.subr.bf16.mxu1 %v1889_v0  ;;  %1628 = vmatprep.subr.bf16.mxu0 %v1889_v0  ;;  %v2320_v29 = vsub.f32 %v2135_v41, %v2544_v23  ;;  %v1542_v41 = vpack.c.bf16 %v626_v39, %v619_v8  ;;  %v1545_v8 = vpack.c.bf16 %v640_v20, %v633_v25 }
  0x7f   : > { %751 = vmatprep.mubr.f32.mxu1 %v2149_v48  ;;  %1093 = vmatprep.mubr.f32.mxu0 %v2149_v48  ;;  %v2338_v43 = vsub.f32 %v2153_v49, %v2546_v42  ;;  %v680_v49 = vand.u32 4294901760, %v2325_v46  ;;  %v2354_v40 = vsub.f32 %v2182_v58, %v2548_v50  ;;  %v1638_v23 = vpack.c.bf16 %v652_v62, %v645_v60 }
  0x80   : > { %v673_v39 = vand.u32 4294901760, %v2320_v29  ;;  %v694_v58 = vand.u32 4294901760, %v2343_v18  ;;  %v2370_v60 = vsub.f32 %v2213_v5, %v2550_v59  ;;  %v2551_v62 = vand.u32 4294901760, %v2219_v9 }
  0x81   : > { %1540 = vmatpush1.bf16.msra.mxu1 %v1539_v34  ;;  %1630 = vmatpush1.bf16.msra.mxu0 %v1629_v7  ;;  %v660_v7 = vsub.f32 %v2301_v13, %v659_v11  ;;  %v667_v34 = vsub.f32 %v2306_v2, %v666_v17  ;;  %v1641_v20 = vpack.c.bf16 %v666_v17, %v659_v11  ;;  %v701_v26 = vand.u32 4294901760, %v2354_v40 }
  0x82   : > { %1541 = vmatprep.subr.bf16.mxu1 %v1889_v0  ;;  %1631 = vmatprep.subr.bf16.mxu0 %v1889_v0  ;;  %v674_v36 = vsub.f32 %v2320_v29, %v673_v39  ;;  %v2375_v25 = vsub.f32 %v2219_v9, %v2551_v62  ;;  %v695_v5 = vsub.f32 %v2343_v18, %v694_v58  ;;  %v715_v32 = vand.u32 4294901760, %v2370_v60 }
  0x83   : > { %v661_v30 = vand.u32 4294901760, %v660_v7  ;;  %v668_v21 = vand.u32 4294901760, %v667_v34  ;;  %v1644_v9 = vpack.c.bf16 %v680_v49, %v673_v39  ;;  %v702_v11 = vsub.f32 %v2354_v40, %v701_v26 }
  0x84   : > { %v675_v33 = vand.u32 4294901760, %v674_v36  ;;  %v696_v50 = vand.u32 4294901760, %v695_v5  ;;  %v1316_v5 = vsub.s32 1, %v2083_v22 }
  0x85   : > { %1543 = vmatpush1.bf16.msra.mxu1 %v1542_v41  ;;  %1633 = vmatpush1.bf16.msra.mxu0 %v1632_v56  ;;  %v687_v56 = vand.u32 4294901760, %v2338_v43  ;;  %v681_v41 = vsub.f32 %v2325_v46, %v680_v49  ;;  %v1551_v28 = vpack.c.bf16 %v668_v21, %v661_v30  ;;  %v703_v30 = vand.u32 4294901760, %v702_v11 }
  0x86   : > { %1544 = vmatprep.subr.bf16.mxu1 %v1889_v0  ;;  %1634 = vmatprep.subr.bf16.mxu0 %v1889_v0  ;;  %v716_v21 = vsub.f32 %v2370_v60, %v715_v32 }
  0x87   : > { %v688_v42 = vsub.f32 %v2338_v43, %v687_v56  ;;  %v682_v7 = vand.u32 4294901760, %v681_v41 }
  0x88   : > { %v717_v62 = vand.u32 4294901760, %v716_v21 }
  0x89   : > { %1546 = vmatpush1.bf16.msra.mxu1 %v1545_v8  ;;  %1636 = vmatpush1.bf16.msra.mxu0 %v1635_v27  ;;  %v708_v27 = vand.u32 4294901760, %v2359_v6  ;;  %v689_v8 = vand.u32 4294901760, %v688_v42  ;;  %v1554_v34 = vpack.c.bf16 %v682_v7, %v675_v33  ;;  %v1566_v42 = vpack.c.bf16 %v2168_v53, %v2163_v52 }
  0x8a   : > { %1547 = vmatprep.subr.bf16.mxu1 %v1889_v0  ;;  %1637 = vmatprep.subr.bf16.mxu0 %v1889_v0  ;;  %v1572_v52 = vpack.c.bf16 %v2230_v15, %v2225_v14  ;;  %v1312_v7 = vsub.s32 0, %v2083_v22 }
  0x8b   : > { %v709_v17 = vsub.f32 %v2359_v6, %v708_v27  ;;  %v1557_v39 = vpack.c.bf16 %v696_v50, %v689_v8  ;;  %v1650_v59 = vpack.c.bf16 %v708_v27, %v701_v26  ;;  %v1569_v26 = vpack.c.bf16 %v2198_v63, %v2192_v61 }
  0x8c   : > { %v1892_v61 = vmov 0.0  }
  0x8d   : > { %1549 = vmatpush1.bf16.msra.mxu1 %v1548_v35  ;;  %1639 = vmatpush1.bf16.msra.mxu0 %v1638_v23  ;;  %v722_v35 = vand.u32 4294901760, %v2375_v25  ;;  %v1647_v23 = vpack.c.bf16 %v694_v58, %v687_v56  ;;  %v710_v49 = vand.u32 4294901760, %v709_v17  ;;  %438 = vst [vmem:[#allocation2] sm:$0x1] %v1892_v61 }
  0x8e   : > { %1550 = vmatprep.subr.bf16.mxu1 %v1889_v0  ;;  %1640 = vmatprep.subr.bf16.mxu0 %v1889_v0 }
  0x8f   : > { %v723_v36 = vsub.f32 %v2375_v25, %v722_v35  ;;  %v1560_v41 = vpack.c.bf16 %v710_v49, %v703_v30  ;;  %v1653_v58 = vpack.c.bf16 %v722_v35, %v715_v32 }
  0x91   : > { %1552 = vmatpush1.bf16.msra.mxu1 %v1551_v28  ;;  %1642 = vmatpush1.bf16.msra.mxu0 %v1641_v20  ;;  %v724_v20 = vand.u32 4294901760, %v723_v36 }
  0x92   : > { %1553 = vmatprep.subr.bf16.mxu1 %v1889_v0  ;;  %1643 = vmatprep.subr.bf16.mxu0 %v1889_v0 }
  0x93   : > { %v1563_v56 = vpack.c.bf16 %v724_v20, %v717_v62 }
  0x95   : > { %1555 = vmatpush1.bf16.msra.mxu1 %v1554_v34  ;;  %1645 = vmatpush1.bf16.msra.mxu0 %v1644_v9 }
  0x96   : > { %1556 = vmatprep.subr.bf16.mxu1 %v1889_v0  ;;  %1646 = vmatprep.subr.bf16.mxu0 %v1889_v0 }
  0x99   : > { %1558 = vmatpush1.bf16.msra.mxu1 %v1557_v39  ;;  %1648 = vmatpush1.bf16.msra.mxu0 %v1647_v23 }
  0x9a   : > { %1559 = vmatprep.subr.bf16.mxu1 %v1889_v0  ;;  %1649 = vmatprep.subr.bf16.mxu0 %v1889_v0 }
  0x9d   : > { %1561 = vmatpush1.bf16.msra.mxu1 %v1560_v41  ;;  %1651 = vmatpush1.bf16.msra.mxu0 %v1650_v59 }
  0x9e   : > { %1562 = vmatprep.subr.bf16.mxu1 %v1889_v0  ;;  %1652 = vmatprep.subr.bf16.mxu0 %v1889_v0 }
  0xa1   : > { %1564 = vmatpush1.bf16.msra.mxu1 %v1563_v56  ;;  %1654 = vmatpush1.bf16.msra.mxu0 %v1653_v58 }
  0xa2   : > { %1565 = vmatprep.subr.bf16.mxu1 %v1889_v0  ;;  %1655 = vmatprep.subr.bf16.mxu0 %v1889_v0 }
  0xa4   : > { %753 = vmatmul.mubr.f32.vlgmr.msra.gmra.mrb[0].mxu1 %v2170_v54  ;;  %1095 = vmatmul.mubr.f32.vlgmr.msra.gmra.mrb[0].mxu0 %v2170_v54 }
  0xa5   : > { %1567 = vmatpush1.bf16.msra.mxu1 %v1566_v42  ;;  %1657 = vmatpush1.bf16.msra.mxu0 %v2060_v12  ;;  %v1575_v12 = vpack.c.bf16 %v2264_v44, %v2258_v37 }
  0xa6   : > { %1568 = vmatprep.subr.bf16.mxu1 %v1889_v0  ;;  %1658 = vmatprep.subr.bf16.mxu0 %v1889_v0 }
  0xa7   : > { %864 = vmatprep.mubr.f32.mxu1 %v2158_v51  ;;  %1185 = vmatprep.mubr.f32.mxu0 %v2149_v48  ;;  %v1593_v48 = vpack.c.bf16 %v2375_v25, %v2370_v60  ;;  %v2552_v51 = vlaneseq }
  0xa9   : > { %1570 = vmatpush1.bf16.msra.mxu1 %v1569_v26  ;;  %1660 = vmatpush1.bf16.msra.mxu0 %v2072_v16  ;;  %v1578_v16 = vpack.c.bf16 %v2288_v57, %v2283_v1  ;;  %vm2454_vm1 = vcmp.lt.s32.totalorder %v2552_v51, 256  ;;  %v1247_v57 = vcombine.high %v2311_v47, %v2311_v47  ;;  %v1206_v59 = vand.u32 127, %v2552_v51 }
  0xaa   : > { %1571 = vmatprep.subr.bf16.mxu1 %v1889_v0  ;;  %1661 = vmatprep.subr.bf16.mxu0 %v1889_v0  ;;  %443 = vst.msk [vmem:[#allocation3] sm:$0x3] %vm2454_vm1, %v1892_v61 }
  0xab   : > { %vm1218_vm8 = vcmp.lt.s32.totalorder %v1206_v59, 10 }
  0xad   : > { %1573 = vmatpush1.bf16.msra.mxu1 %v1572_v52  ;;  %1663 = vmatpush1.bf16.msra.mxu0 %v2091_v24  ;;  %v1581_v24 = vpack.c.bf16 %v2306_v2, %v2301_v13  ;;  %v1893_v2 = vmov 1966171168  }
  0xae   : > { %1574 = vmatprep.subr.bf16.mxu1 %v1889_v0  ;;  %1664 = vmatprep.subr.bf16.mxu0 %v1889_v0 }
  0xb1   : > { %1576 = vmatpush1.bf16.msra.mxu1 %v1575_v12  ;;  %1666 = vmatpush1.bf16.msra.mxu0 %v2112_v31  ;;  %v1584_v31 = vpack.c.bf16 %v2325_v46, %v2320_v29  ;;  %v1270_v29 = vunpack.c.l.s4 %v1893_v2  ;;  %v1237_v28 = vld [vmem:[#allocation3] sm:$0x3] }
  0xb2   : > { %1577 = vmatprep.subr.bf16.mxu1 %v1889_v0  ;;  %1667 = vmatprep.subr.bf16.mxu0 %v1889_v0 }
  0xb5   : > { %1579 = vmatpush1.bf16.msra.mxu1 %v1578_v16  ;;  %1669 = vmatpush1.bf16.msra.mxu0 %v2129_v38  ;;  %v1587_v38 = vpack.c.bf16 %v2343_v18, %v2338_v43 }
  0xb6   : > { %1580 = vmatprep.subr.bf16.mxu1 %v1889_v0  ;;  %1670 = vmatprep.subr.bf16.mxu0 %v1889_v0 }
  0xb9   : > { %1582 = vmatpush1.bf16.msra.mxu1 %v1581_v24  ;;  %1672 = vmatpush1.bf16.msra.mxu0 %v2145_v45  ;;  %v1590_v45 = vpack.c.bf16 %v2359_v6, %v2354_v40  ;;  %v1271_v40 = vunpack.c.0.s8 %v1270_v29 }
  0xba   : > { %1583 = vmatprep.subr.bf16.mxu1 %v1889_v0  ;;  %1673 = vmatprep.subr.bf16.mxu0 %v1889_v0 }
  0xbb   : > { %v1274_v60 = vsub.s32 %v1271_v40, %v2083_v22 }
  0xbd   : > { %1585 = vmatpush1.bf16.msra.mxu1 %v1584_v31  ;;  %1675 = vmatpush1.bf16.msra.mxu0 %v2178_v55  ;;  %v448_v55 = vstv %s1497_s17 }
  0xbe   : > { %1586 = vmatprep.subr.bf16.mxu1 %v1889_v0  ;;  %1676 = vmatprep.subr.bf16.mxu0 %v1889_v0 }
  0xc1   : > { %1588 = vmatpush1.bf16.msra.mxu1 %v1587_v38  ;;  %1678 = vmatpush1.bf16.msra.mxu0 %v2211_v4 }
  0xc2   : > { %1589 = vmatprep.subr.bf16.mxu1 %v1889_v0  ;;  %1679 = vmatprep.subr.bf16.mxu0 %v1889_v0 }
  0xc5   : > { %1591 = vmatpush1.bf16.msra.mxu1 %v1590_v45  ;;  %1681 = vmatpush1.bf16.msra.mxu0 %v2242_v10 }
  0xc6   : > { %1592 = vmatprep.subr.bf16.mxu1 %v1889_v0  ;;  %1682 = vmatprep.subr.bf16.mxu0 %v1889_v0  ;;  %v2466_v0 = vadd.s32 %v448_v55, %v2083_v22 }
  0xc8   : > { %vm450_vm3 = vcmp.lt.s32.totalorder %v2466_v0, 2 }
  0xc9   : > { %1594 = vmatpush1.bf16.msra.mxu1 %v1593_v48  ;;  %1684 = vmatpush1.bf16.msra.mxu0 %v2275_v19  ;;  %v1251_v63 = vsel %vm450_vm3, %v1247_v57, 0.0  ;;  %vm1221_vm9 = vmand %vm450_vm3, %vm1218_vm8 }
  0xcc   : > { %867 = vmatmul.mubr.f32.vlgmr.msra.gmra.mrb[0].mxu1 %v2203_v3  ;;  %1187 = vmatmul.mubr.f32.vlgmr.msra.gmra.mrb[0].mxu0 %v2170_v54  ;;  %v1250_v54 = vsel %vm450_vm3, %v2311_v47, 0.0  ;;  %v1259_v3 = vsel %vm1224_vm2, %v1251_v63, 0.0  ;;  %v1223_v63 = vld [vmem:[#allocation2] sm:$0x1] }
  0xcd   : > { %v1252_v1 = vsel %vm1224_vm2, %v1250_v54, 0.0  ;;  %v1260_v14 = vrot.slane %v1259_v3, 4 }
  0xce   : > { %v1253_v4 = vrot.slane %v1252_v1, 4 }
  0xcf   : > { %v1261_v10 = vadd.f32 %v1260_v14, %v1259_v3 }
  0xd0   : > { %v1254_v15 = vadd.f32 %v1253_v4, %v1252_v1 }
  0xd1   : > { %v1262_v44 = vrot.slane %v1261_v10, 2 }
  0xd2   : > { %v1255_v37 = vrot.slane %v1254_v15, 2 }
  0xd3   : > { %v1263_v13 = vadd.f32 %v1262_v44, %v1261_v10 }
  0xd4   : > { %v1256_v19 = vadd.f32 %v1255_v37, %v1254_v15 }
  0xd5   : > { %v1264_v43 = vrot.slane %v1263_v13, 1 }
  0xd6   : > { %v1257_v46 = vrot.slane %v1256_v19, 1  ;;  %v1210_v56 = vpop.permute.xlu0 %1209 }
  0xd7   : > { %v1265_v18 = vadd.f32 %v1264_v43, %v1263_v13  ;;  %vm1211_vm7 = vcmp.eq.s32.totalorder %v1206_v59, %v1210_v56 }
  0xd8   : > { %v1258_v47 = vadd.f32 %v1257_v46, %v1256_v19  ;;  %v1499_v16 = vsel %vm1211_vm7, 1.0, %v1892_v61 }
  0xda   : > { %v1268_v6 = vcombine.low %v1258_v47, %v1265_v18 }
  0xdc   : > { %v1275_v25 = vrot.slane %v1268_v6, %v1274_v60 }
  0xde   : > { %v1282_v27 = vrot.slane %v1275_v25, %v1274_v60 }
  0xe0   : > { %v1284_v33 = vadd.f32 %v1282_v27, %v1237_v28 }
  0xe2   : > { %1289 = vst.msk [vmem:[#allocation3] sm:$0x3] %vm2454_vm1, %v1284_v33 }
  0xe9   : > { %v1308_v9 = vld [vmem:[#allocation3] sm:$0x3] }
  0xea   : > { %v1313_v8 = vrot.slane %v1308_v9, %v1312_v7  ;;  %v1317_v11 = vrot.slane %v1308_v9, %v1316_v5 }
  0xec   : > { %v1320_v17 = vsel %vm1294_vm4, %v1313_v8, 0.0  ;;  %v1321_v34 = vsel %vm1294_vm4, %v1317_v11, 0.0 }
  0xed   : > { %v1322_v50 = vadd.f32 %v1321_v34, %v1320_v17 }
  0xef   : > { %1323 = vadd.xlane.f32.xlu1 %v1322_v50 }
 0x17c   : > { %v1324_v14 = vpop.xlane.xlu1 %1323 }
 0x17d   : > { %v1325_v0 = vrot.slane %v1324_v14, 4 }
 0x17f   : > { %v1326_v15 = vadd.f32 %v1325_v0, %v1324_v14 }
 0x181   : > { %v1327_v10 = vrot.slane %v1326_v15, 2 }
 0x183   : > { %v1328_v13 = vadd.f32 %v1327_v10, %v1326_v15 }
 0x185   : > { %v1329_v46 = vrot.slane %v1328_v13, 1 }
 0x187   : > { %v1330_v18 = vadd.f32 %v1329_v46, %v1328_v13 }
 0x19f   : > { %v868_v32 = vpop.f32.mrb[0].mxu1  ;;  %v1188_v35 = vpop.f32.mrb[0].mxu0 }
 0x1a0   : > { %v1685_v23 = vadd.f32 %v1188_v35, %v868_v32  ;;  %v870_v30 = vpop.f32.mrb[1].mxu1  ;;  %v1190_v39 = vpop.f32.mrb[1].mxu0 }
 0x1a2   : > { %1772 = vrsqrt.f32 %v1685_v23  ;;  %vm1194_vm5 = vcmp.eq.f32.partialorder %v1685_v23, inf  ;;  %v1197_v22 = vand.u32 2147483648, %v1685_v23  ;;  %vm1196_vm6 = vcmp.eq.f32.partialorder %v1685_v23, 0.0 }
 0x1ac   : > { %v1773_v49 = vpop.eup %1772 }
 0x1ad   : > { %v1193_v21 = vmul.f32 %v1773_v49, %v1685_v23 }
 0x1af   : > { %v1195_v36 = vsel %vm1194_vm5, %v1685_v23, %v1193_v21 }
 0x1b0   : > { %v1198_v41 = vsel %vm1196_vm6, %v1197_v22, %v1195_v36 }
 0x1b1   : > { %v1199_v62 = vsub.f32 0.9, %v1198_v41  ;;  %v1498_v20 = vadd.f32 -0.1, %v1198_v41 }
 0x1b3   : > { %v1200_v58 = vmax.f32 %v1199_v62, 0.0  ;;  %v1203_v42 = vmax.f32 %v1498_v20, 0.0 }
 0x1b5   : > { %v1204_v26 = vmul.f32 %v1203_v42, %v1203_v42  ;;  %v1201_v52 = vmul.f32 %v1200_v58, %v1200_v58 }
 0x1b7   : > { %v1214_v12 = vmul.f32 0.5, %v1204_v26 }
 0x1b9   : > { %v1215_v24 = vsub.f32 %v1201_v52, %v1214_v12 }
 0x1bb   : > { %v1216_v31 = vmul.f32 %v1499_v16, %v1215_v24 }
 0x1bd   : > { %v1217_v38 = vadd.f32 %v1216_v31, %v1214_v12 }
 0x1bf   : > { %v1222_v45 = vsel %vm1221_vm9, %v1217_v38, 0.0 }
 0x1c0   : > { %v1225_v48 = vsel %vm1224_vm2, %v1222_v45, 0.0 }
 0x1c1   : > { %v1226_v51 = vrot.slane %v1225_v48, 4 }
 0x1c3   : > { %v1227_v53 = vadd.f32 %v1226_v51, %v1225_v48 }
 0x1c5   : > { %v1228_v55 = vrot.slane %v1227_v53, 2 }
 0x1c7   : > { %v1229_v57 = vadd.f32 %v1228_v55, %v1227_v53 }
 0x1c9   : > { %v1230_v54 = vrot.slane %v1229_v57, 1 }
 0x1cb   : > { %v1231_v1 = vadd.f32 %v1230_v54, %v1229_v57 }
 0x1cd   : > { %v1232_v3 = vadd.f32 %v1231_v1, %v1223_v63 }
 0x1cf   : > { %1233 = vst [vmem:[#allocation2] sm:$0x1] %v1232_v3 }
 0x1d6   : > { %v1293_v61 = vld [vmem:[#allocation2] sm:$0x1] }
 0x1d7   : > { %v1295_v4 = vsel %vm1294_vm4, %v1293_v61, 0.0 }
 0x1d8   : > { %1296 = vadd.xlane.f32.xlu0 %v1295_v4 }
 0x265   : > { %v1297_v37 = vpop.xlane.xlu0 %1296 }
 0x266   : > { %v1298_v44 = vrot.slane %v1297_v37, 4 }
 0x268   : > { %v1299_v19 = vadd.f32 %v1298_v44, %v1297_v37 }
 0x26a   : > { %v1300_v2 = vrot.slane %v1299_v19, 2 }
 0x26c   : > { %v1301_v29 = vadd.f32 %v1300_v2, %v1299_v19 }
 0x26e   : > { %v1302_v43 = vrot.slane %v1301_v29, 1 }
 0x270   : > { %v1303_v47 = vadd.f32 %v1302_v43, %v1301_v29 }
 0x272   : > { %1694 = vpush %v1303_v47 }
 0x273   : > { %1696 = vpush %v1330_v18 }
 0x2a3   : > { %s1695_s21 = spop %1694 }
 0x2a4   : > { %v1305_v40 = vstv %s1695_s21  ;;  %s1697_s27 = spop %1696 }
 0x2a5   : > { %1307 = vst.msk [vmem:[%s430_s20] sm:$0x1] %vm1306_vm10, %v1305_v40  ;;  %v1332_v6 = vstv %s1697_s27 }
 0x2a6   : > { %1333 = vst.msk [vmem:[%s433_s29] sm:$0x1] %vm1306_vm10, %v1332_v6 }
 0x2a7 PF: > { %s21_s25 = sadd.s32 1, %s1883_s25   ;;  %s2555_s21 = smov %s1871_s22 }
 0x2a8   : > { %p18_p3 = scmp.ge.s32.totalorder %s21_s25, 4   ;;  %s2501_s22 = smov 0  }
 0x2a9   : > { %s2556_s23 = smov %s1879_s24  ;;  %s2557_s24 = smov %s2559_s9 }
 0x2aa   :  { %20 = sbr.rel (!%p18_p3) target bundleno = 5 (0x5), region = 113 }
 0x2b1   :  { %1363 = vsyncpa [#allocation5], 1 }
 0x2b2   :  { %1365 = vsyncpa [#allocation5 + $0x1], 1 }
 0x2b3   :  { %1366 = vsyncpa [#allocation7], 1 }

</bundles_post_ra>
